<compile_context>
chip_gen: v7x
topology: tpu7x:2x2x1
jax: 0.10.0
libtpu: 0.0.40
codegen_flags: <defaults>
</compile_context>

<pallas_src>
import jax
import jax.numpy as jnp
from jax import lax
from jax.experimental import pallas as pl
from jax.experimental.pallas import tpu as pltpu


def _round_up(x: int, m: int) -> int:
    return ((x + m - 1) // m) * m


NSEM = 16  # rolling window of in-flight row DMAs per token block (power of 2)


def _embed_gather_kernel(ids_ref, table_ref, out_ref, copy_sems):
    """Gather `tb` embedding rows from the HBM table into one output tile.

    ids_ref   : SMEM (N_pad,) int32      -- all (clamped, padded) token ids
    table_ref : HBM  (V, D_pad) float32  -- embedding table, never in VMEM
    out_ref   : VMEM (TB, D_pad) float32 -- gathered rows (lane-dense tile)
    copy_sems : DMA semaphores (NSEM,)   -- rolling in-flight window
    """
    tb = out_ref.shape[0]
    base = pl.program_id(0) * tb

    def row_copy(r):
        tok = ids_ref[base + r]
        return pltpu.make_async_copy(
            table_ref.at[pl.ds(tok, 1), :],      # (1, D_pad) row in HBM
            out_ref.at[pl.ds(r, 1), :],          # (1, D_pad) row in VMEM
            copy_sems.at[r & (NSEM - 1)],
        )

    def issue(r, carry):
        # Retire the copy that previously used this semaphore slot so at most
        # NSEM row DMAs are ever in flight.
        @pl.when(r >= NSEM)
        def _():
            row_copy(r - NSEM).wait()

        row_copy(r).start()
        return carry

    lax.fori_loop(0, tb, issue, 0)

    # Drain the tail of the in-flight window (the last min(tb, NSEM) copies).
    def drain(r, carry):
        row_copy(r).wait()
        return carry

    lax.fori_loop(max(0, tb - NSEM), tb, drain, 0)


def embedding_lookup(ids_flat: jax.Array, table_padded: jax.Array, *,
                     vocab_size: int, tb: int = 256) -> jax.Array:
    """ids_flat: (N,) integer ids; table_padded: (V, D_pad) f32 (D_pad % 128 == 0).

    Returns (N, D_pad) gathered rows (bit-exact copies of table rows).
    """
    (N,) = ids_flat.shape
    V, d_pad = table_padded.shape

    # Token block: big enough to amortize the ~0.35us/grid-step overhead and
    # keep output DMAs large, clamped to the 8-aligned token count for tiny
    # inputs (sublane dim must stay a multiple of 8).  Sweep 256..1024 for
    # large N; VMEM cost is only the double-buffered (tb, D_pad) output tile.
    tb = max(8, min(tb, _round_up(N, 8)))
    n_pad = _round_up(N, tb)

    # Clamp out-of-range ids (no runtime bounds check inside the kernel) and
    # pad the token axis; padded tail tokens gather row 0 and are sliced off.
    ids = jnp.clip(ids_flat.astype(jnp.int32), 0, vocab_size - 1)
    ids = jnp.pad(ids, (0, n_pad - N))

    # Memory-bound: read N rows + write N rows + read ids.  flops ~ 0.
    cost = pl.CostEstimate(
        flops=0,
        transcendentals=0,
        bytes_accessed=2 * n_pad * d_pad * 4 + n_pad * 4,
    )

    # Footprint: 2 (double-buffer) x output tile; table stays in HBM.  Give a
    # little slack but keep well under every generation's scoped VMEM limit.
    vmem_bytes = max(4 << 20, 4 * tb * d_pad * 4)

    out = pl.pallas_call(
        _embed_gather_kernel,
        out_shape=jax.ShapeDtypeStruct((n_pad, d_pad), table_padded.dtype),
        grid_spec=pltpu.PrefetchScalarGridSpec(
            num_scalar_prefetch=1,                      # ids -> SMEM
            grid=(n_pad // tb,),
            in_specs=[pl.BlockSpec(memory_space=pl.ANY)],  # table stays in HBM
            out_specs=pl.BlockSpec((tb, d_pad), lambda i, ids: (i, 0)),
            scratch_shapes=[pltpu.SemaphoreType.DMA((NSEM,))],
        ),
        compiler_params=pltpu.CompilerParams(
            dimension_semantics=("parallel",),  # independent output tiles
            vmem_limit_bytes=vmem_bytes,
        ),
        cost_estimate=cost,
    )(ids, table_padded)

    return out[:N]


class EmbeddingPallas:
    """Mirrors model/model2.py::Embedding.forward (pure lookup, frozen weights)."""

    def __init__(self, vocab_size: int, emb_dim: int, key: jax.Array):
        self.vocab_size = vocab_size
        self.emb_dim = emb_dim
        # Deterministic stand-in for `vocab.vectors` (frozen, no grad).
        self.weight = jax.random.normal(key, (vocab_size, emb_dim), dtype=jnp.float32)
        # One-time column padding of the frozen table (D -> multiple of 128) so
        # every gathered row / output tile is lane-dense.  Hoisted out of the
        # forward path — no per-call HBM copy of the table.
        d_pad = _round_up(emb_dim, 128)
        self.table_padded = jnp.pad(self.weight, ((0, 0), (0, d_pad - emb_dim)))

    def __call__(self, x: jax.Array) -> jax.Array:
        # x: (B, S) int token ids -> (B, S, D) float32 embeddings.
        B, S = x.shape
        out_flat = embedding_lookup(
            x.reshape(-1), self.table_padded, vocab_size=self.vocab_size
        )
        return out_flat[:, : self.emb_dim].reshape(B, S, self.emb_dim)


if __name__ == "__main__":
    key = jax.random.PRNGKey(0)
    k_w, k_ids = jax.random.split(key)

    VOCAB, EMB_DIM = 32, 128
    B, S = 2, 8

    module = EmbeddingPallas(VOCAB, EMB_DIM, k_w)
    x = jax.random.randint(k_ids, (B, S), 0, VOCAB, dtype=jnp.int32)

    out = module(x)
    out = jax.block_until_ready(out)

    # Reference check against plain JAX gather (== torch.nn.Embedding forward).
    ref = jnp.take(module.weight, x, axis=0)
    assert out.shape == (B, S, EMB_DIM)
    assert out.dtype == jnp.float32
    # DMA row gather is a bit-exact copy of the table rows.
    assert bool(jnp.array_equal(out, ref)), float(jnp.max(jnp.abs(out - ref)))

    print("KERNEL_OK")
</pallas_src>

<mosaic_0001>
module attributes {stable_mosaic.version = 11 : i64} {
  func.func @_embed_gather_kernel(%arg0: i32, %arg1: memref<16xi32, #tpu.memory_space<smem>>, %arg2: memref<32x128xf32, #tpu.memory_space<any>>, %arg3: memref<16x128xf32, #tpu.memory_space<vmem>>, %arg4: memref<16x!tpu.dma_semaphore, #tpu.memory_space<semaphore_mem>>) attributes {dimension_semantics = [#tpu.dimension_semantics<parallel>], iteration_bounds = array<i64: 1>, scalar_prefetch = 1 : i64, scratch_operands = 1 : i64, tpu.core_type = #tpu.core_type<tc>, window_params = [{}, {transform_indices = @transform_1, window_bounds = array<i64: 16, 128>}]} {
    %c16_i32 = arith.constant 16 : i32
    %0 = arith.muli %arg0, %c16_i32 : i32
    %c0_i32 = arith.constant 0 : i32
    %c16_i32_0 = arith.constant 16 : i32
    %1 = arith.addi %c0_i32, %c16_i32_0 : i32
    %c1_i32 = arith.constant 1 : i32
    scf.for %arg5 = %c0_i32 to %1 step %c1_i32  : i32 {
      %c16_i32_6 = arith.constant 16 : i32
      %3 = arith.cmpi sge, %arg5, %c16_i32_6 : i32
      %4 = arith.extui %3 : i1 to i32
      %c0_i32_7 = arith.constant 0 : i32
      %5 = arith.cmpi ne, %4, %c0_i32_7 : i32
      scf.if %5 {
        %c16_i32_10 = arith.constant 16 : i32
        %14 = arith.subi %arg5, %c16_i32_10 : i32
        %15 = arith.addi %0, %14 : i32
        %16 = arith.index_cast %15 : i32 to index
        %17 = memref.load %arg1[%16] : memref<16xi32, #tpu.memory_space<smem>>
        %c15_i32_11 = arith.constant 15 : i32
        %18 = arith.andi %14, %c15_i32_11 : i32
        %c0_i32_12 = arith.constant 0 : i32
        %19 = tpu.memref_slice %arg2[%17, %c0_i32_12] : memref<32x128xf32, #tpu.memory_space<any>> -> memref<1x128xf32, #tpu.memory_space<any>>
        %c0_i32_13 = arith.constant 0 : i32
        %20 = tpu.memref_slice %arg3[%14, %c0_i32_13] : memref<16x128xf32, #tpu.memory_space<vmem>> -> memref<1x128xf32, #tpu.memory_space<vmem>>
        %21 = tpu.memref_slice %arg4[%18] : memref<16x!tpu.dma_semaphore, #tpu.memory_space<semaphore_mem>> -> memref<1x!tpu.dma_semaphore, #tpu.memory_space<semaphore_mem>>
        %22 = tpu.memref_squeeze %21 : memref<1x!tpu.dma_semaphore, #tpu.memory_space<semaphore_mem>> -> memref<!tpu.dma_semaphore, #tpu.memory_space<semaphore_mem>>
        tpu.wait_dma2 semaphore(%22 : memref<!tpu.dma_semaphore, #tpu.memory_space<semaphore_mem>>) src(%19 : memref<1x128xf32, #tpu.memory_space<any>>) dst(%20 : memref<1x128xf32, #tpu.memory_space<vmem>>)
      } else {
      }
      %6 = arith.addi %0, %arg5 : i32
      %7 = arith.index_cast %6 : i32 to index
      %8 = memref.load %arg1[%7] : memref<16xi32, #tpu.memory_space<smem>>
      %c15_i32 = arith.constant 15 : i32
      %9 = arith.andi %arg5, %c15_i32 : i32
      %c0_i32_8 = arith.constant 0 : i32
      %10 = tpu.memref_slice %arg2[%8, %c0_i32_8] : memref<32x128xf32, #tpu.memory_space<any>> -> memref<1x128xf32, #tpu.memory_space<any>>
      %c0_i32_9 = arith.constant 0 : i32
      %11 = tpu.memref_slice %arg3[%arg5, %c0_i32_9] : memref<16x128xf32, #tpu.memory_space<vmem>> -> memref<1x128xf32, #tpu.memory_space<vmem>>
      %12 = tpu.memref_slice %arg4[%9] : memref<16x!tpu.dma_semaphore, #tpu.memory_space<semaphore_mem>> -> memref<1x!tpu.dma_semaphore, #tpu.memory_space<semaphore_mem>>
      %13 = tpu.memref_squeeze %12 : memref<1x!tpu.dma_semaphore, #tpu.memory_space<semaphore_mem>> -> memref<!tpu.dma_semaphore, #tpu.memory_space<semaphore_mem>>
      tpu.enqueue_dma source(%10 : memref<1x128xf32, #tpu.memory_space<any>>) target(%11 : memref<1x128xf32, #tpu.memory_space<vmem>>) target_semaphore(%13 : memref<!tpu.dma_semaphore, #tpu.memory_space<semaphore_mem>>)
    }
    %c16_i32_1 = arith.constant 16 : i32
    %c0_i32_2 = arith.constant 0 : i32
    %c16_i32_3 = arith.constant 16 : i32
    %2 = arith.addi %c0_i32_2, %c16_i32_3 : i32
    %c1_i32_4 = arith.constant 1 : i32
    scf.for %arg5 = %c0_i32_2 to %2 step %c1_i32_4  : i32 {
      %3 = arith.addi %0, %arg5 : i32
      %4 = arith.index_cast %3 : i32 to index
      %5 = memref.load %arg1[%4] : memref<16xi32, #tpu.memory_space<smem>>
      %c15_i32 = arith.constant 15 : i32
      %6 = arith.andi %arg5, %c15_i32 : i32
      %c0_i32_6 = arith.constant 0 : i32
      %7 = tpu.memref_slice %arg2[%5, %c0_i32_6] : memref<32x128xf32, #tpu.memory_space<any>> -> memref<1x128xf32, #tpu.memory_space<any>>
      %c0_i32_7 = arith.constant 0 : i32
      %8 = tpu.memref_slice %arg3[%arg5, %c0_i32_7] : memref<16x128xf32, #tpu.memory_space<vmem>> -> memref<1x128xf32, #tpu.memory_space<vmem>>
      %9 = tpu.memref_slice %arg4[%6] : memref<16x!tpu.dma_semaphore, #tpu.memory_space<semaphore_mem>> -> memref<1x!tpu.dma_semaphore, #tpu.memory_space<semaphore_mem>>
      %10 = tpu.memref_squeeze %9 : memref<1x!tpu.dma_semaphore, #tpu.memory_space<semaphore_mem>> -> memref<!tpu.dma_semaphore, #tpu.memory_space<semaphore_mem>>
      tpu.wait_dma2 semaphore(%10 : memref<!tpu.dma_semaphore, #tpu.memory_space<semaphore_mem>>) src(%7 : memref<1x128xf32, #tpu.memory_space<any>>) dst(%8 : memref<1x128xf32, #tpu.memory_space<vmem>>)
    }
    %c16_i32_5 = arith.constant 16 : i32
    return
  }
  func.func @transform_1(%arg0: i32, %arg1: memref<16xi32, #tpu.memory_space<smem>>) -> (i32, i32) {
    %c0_i32 = arith.constant 0 : i32
    %c0_i32_0 = arith.constant 0 : i32
    return %arg0, %c0_i32 : i32, i32
  }
}

</mosaic_0001>

<bundles_post_ra>
// kernel: tpu_custom_call.1
= control target key start
LH: loop header
LB: loop body
LE: loop exit
PB: predicated region body
PF: predicated region fallthrough
CT: control target
= control target key end

     0   :  { %s402_s0 = inlined_call_operand.hbm [shape: s32[16], index: 0, kind: input, shape index: {}]   ;;  %s403_s1 = inlined_call_operand.hbm [shape: f32[32,128], index: 1, kind: input, shape index: {}]   ;;  %s404_s2 = inlined_call_operand.hbm [shape: f32[16,128], index: 2, kind: output, shape index: {}]  }
   0x1   :  { %s247_s11 = scalar_lea.hbm %s402_s0, 16 }
   0x2   :  { %p248_p0 = scmp.ne.s32.totalorder %s402_s0, %s247_s11  ;;  %p251_p1 = scmp.lt.u32.totalorder %s247_s11, %s402_s0 }
   0x4   :  { %p253_p2 = pnand %p251_p1, %p248_p0 }
   0x6   :  { %256 = shalt.err (!%p253_p2)  }
   0x7   :  { %s329_s16 = smov [#allocation4]  }
   0x8   :  { %8 = dma.hbm_to_smem %s402_s0, 16, %s329_s16, [#allocation3] }
   0x9   :  { %311 = dma.done.wait [#allocation3], 16 }
   0xa   :  { %312 = vsyncadd [#allocation3], 4294967280 }
   0xb   :  { %10 = sfence }
   0xc   :  { %11 = vsyncpa [#allocation6], 0  ;;  %s360_s19 = smov 0  }
   0xd LB: > { %p226_p3 = scmp.ge.s32.totalorder %s323_s19, 16  ;;  %s206_s20 = sadd.s32 4294967280, %s323_s19  ;;  %s323_s19 = sphi %s360_s19, %s18_s19  }
   0xe   : > { %s26_s21 = sand.u32 15, %s206_s20 }
   0xf   : > { %s27_s22 = scalar_lea.sflag [#allocation2], %s26_s21 }
  0x10   : > { %314 = dma.done.wait (%p226_p3), %s27_s22, 16 }
  0x11   : > { %316 = vsyncadd (%p226_p3), %s27_s22, 4294967280  ;;  %s32_s0 = sld [smem:[#allocation4 + %s323_s19]]  ;;  %s33_s23 = sand.u32 15, %s323_s19 }
  0x12   : > { %s36_s24 = scalar_lea.vmem [#allocation5], %s323_s19  ;;  %s37_s30 = scalar_lea.sflag [#allocation2], %s33_s23 }
  0x13   : > { %s45_s25 = sshll.u32 %s36_s24, 4  ;;  %s259_s6 = scalar_lea.hbm %s403_s1, 512  ;;  %s46_s25 = int_to_ptr.vmem [resolvable:$true] %s45_s25 }
  0x17   : > { %s207_s26 = sshll.u32 %s32_s0, 4 }
  0x18   : > { %s35_s29 = scalar_lea.hbm %s403_s1, %s207_s26 }
  0x19   : > { %s257_s3 = scalar_lea.hbm %s35_s29, 16  ;;  %p260_p5 = scmp.lt.u32.totalorder %s35_s29, %s403_s1 }
  0x1a   : > { %p258_p4 = scmp.ne.s32.totalorder %s35_s29, %s257_s3  ;;  %p261_p6 = scmp.lt.u32.totalorder %s259_s6, %s257_s3 }
  0x1b   : > { %p263_p8 = scmp.lt.u32.totalorder %s257_s3, %s35_s29 }
  0x1c   : > { %p262_p7 = por %p261_p6, %p260_p5 }
  0x1e   : > { %p264_p9 = por %p263_p8, %p262_p7 }
  0x20   : > { %p265_p10 = pnand %p264_p9, %p258_p4 }
  0x22   : > { %268 = shalt.err (!%p265_p10)  }
  0x23   : > { %s269_s9 = scalar_lea.vmem %s46_s25, 16  ;;  %s330_s10 = smov [#allocation5]  }
  0x24   : > { %p270_p11 = scmp.ne.s32.totalorder %s46_s25, %s269_s9  ;;  %s271_s11 = sshll.u32 %s330_s10, 4  ;;  %s379_s11 = int_to_ptr.vmem [resolvable:$false] %s271_s11 }
  0x25   : > { %s273_s12 = scalar_lea.vmem %s379_s11, 256  ;;  %p274_p12 = scmp.lt.s32.totalorder %s46_s25, %s379_s11 }
  0x26   : > { %p275_p13 = scmp.lt.s32.totalorder %s273_s12, %s269_s9 }
  0x28   : > { %p276_p0 = por %p275_p13, %p274_p12 }
  0x2a   : > { %p277_p1 = pnand %p276_p0, %p270_p11 }
  0x2c   : > { %280 = shalt.err (!%p277_p1)  }
  0x2d   : > { %48 = dma.hbm_to_vmem [thread:$0]  %s35_s29, 16, %s46_s25, %s37_s30 }
  0x2e   : > { %s18_s19 = sadd.s32 1, %s323_s19  }
  0x2f   : > { %p15_p2 = scmp.ge.s32.totalorder %s18_s19, 16  }
  0x30   :  { %s325_s13 = smov (%p15_p2), 0  }
  0x31   :  { %17 = sbr.rel (!%p15_p2) target bundleno = 13 (0xd), region = 62 }
  0x38 LB: > { %s57_s14 = sand.u32 15, %s327_s13  ;;  %s327_s13 = sphi %s325_s13, %s54_s13  }
  0x39   : > { %s58_s15 = scalar_lea.sflag [#allocation2], %s57_s14 }
  0x3a   : > { %317 = dma.done.wait %s58_s15, 16 }
  0x3b   : > { %318 = vsyncadd %s58_s15, 4294967280  ;;  %s54_s13 = sadd.s32 1, %s327_s13  }
  0x3c   : > { %p51_p3 = scmp.ge.s32.totalorder %s54_s13, 16  }
  0x3d   :  { %p282_p4 = scmp.ne.s32.totalorder (%p51_p3), %s379_s11, %s273_s12  ;;  %p286_p5 = scmp.lt.s32.totalorder (%p51_p3), %s379_s11, %s379_s11 }
  0x3e   :  { %53 = sbr.rel (!%p51_p3) target bundleno = 56 (0x38), region = 73  ;;  %p287_p6 = scmp.lt.s32.totalorder (%p51_p3), %s273_s12, %s273_s12 }
  0x40   :  { %p288_p7 = por (%p51_p3), %p287_p6, %p286_p5 }
  0x42   :  { %p289_p8 = pnand (%p51_p3), %p288_p7, %p282_p4 }
  0x45   :  { %292 = shalt.err (!%p289_p8)
}
  0x46   :  { %s293_s17 = scalar_lea.hbm %s404_s2, 256 }
  0x47   :  { %p294_p9 = scmp.ne.s32.totalorder %s404_s2, %s293_s17  ;;  %p297_p10 = scmp.lt.u32.totalorder %s293_s17, %s404_s2 }
  0x49   :  { %p299_p11 = pnand %p297_p10, %p294_p9 }
  0x4b   :  { %302 = shalt.err (!%p299_p11)
}
  0x4c   :  { %s331_s22 = smov 128   ;;  %s332_s0 = smov 8  }
  0x4d   :  { %73 = dma.vmem_to_hbm [thread:$0]  %s379_s11, 256, %s404_s2, [#allocation6], %s331_s22, %s331_s22, %s332_s0  }
  0x4e   :  { %319 = dma.done.wait [#allocation6], 256  }
  0x4f   :  { %320 = vsyncadd [#allocation6], 4294967040 }
  0x50   :  { %77 = vsyncpa [#allocation6], 1 }
  0x51   :  { %78 = vsyncmov [#allocation2] }
  0x54   :  { %s79_s25 = vpop.sfrf %78 }
  0x55   :  { %p208_p12 = scmp.ne.s32.totalorder %s79_s25, 0 }
  0x57   :  { %83 = shalt.err (%p208_p12)  }
  0x58   :  { %85 = vsyncmov [#allocation2 + $0x1] }
  0x5b   :  { %s86_s26 = vpop.sfrf %85 }
  0x5c   :  { %p209_p13 = scmp.ne.s32.totalorder %s86_s26, 0 }
  0x5e   :  { %90 = shalt.err (%p209_p13)  }
  0x5f   :  { %92 = vsyncmov [#allocation2 + $0x2] }
  0x62   :  { %s93_s27 = vpop.sfrf %92 }
  0x63   :  { %p210_p0 = scmp.ne.s32.totalorder %s93_s27, 0 }
  0x65   :  { %97 = shalt.err (%p210_p0)  }
  0x66   :  { %99 = vsyncmov [#allocation2 + $0x3] }
  0x69   :  { %s100_s28 = vpop.sfrf %99 }
  0x6a   :  { %p211_p1 = scmp.ne.s32.totalorder %s100_s28, 0 }
  0x6c   :  { %104 = shalt.err (%p211_p1)  }
  0x6d   :  { %106 = vsyncmov [#allocation2 + $0x4] }
  0x70   :  { %s107_s2 = vpop.sfrf %106 }
  0x71   :  { %p212_p2 = scmp.ne.s32.totalorder %s107_s2, 0 }
  0x73   :  { %111 = shalt.err (%p212_p2)  }
  0x74   :  { %113 = vsyncmov [#allocation2 + $0x5] }
  0x77   :  { %s114_s29 = vpop.sfrf %113 }
  0x78   :  { %p213_p3 = scmp.ne.s32.totalorder %s114_s29, 0 }
  0x7a   :  { %118 = shalt.err (%p213_p3)  }
  0x7b   :  { %120 = vsyncmov [#allocation2 + $0x6] }
  0x7e   :  { %s121_s30 = vpop.sfrf %120 }
  0x7f   :  { %p214_p4 = scmp.ne.s32.totalorder %s121_s30, 0 }
  0x81   :  { %125 = shalt.err (%p214_p4)  }
  0x82   :  { %127 = vsyncmov [#allocation2 + $0x7] }
  0x85   :  { %s128_s3 = vpop.sfrf %127 }
  0x86   :  { %p215_p5 = scmp.ne.s32.totalorder %s128_s3, 0 }
  0x88   :  { %132 = shalt.err (%p215_p5)  }
  0x89   :  { %134 = vsyncmov [#allocation2 + $0x8] }
  0x8c   :  { %s135_s4 = vpop.sfrf %134 }
  0x8d   :  { %p216_p6 = scmp.ne.s32.totalorder %s135_s4, 0 }
  0x8f   :  { %139 = shalt.err (%p216_p6)  }
  0x90   :  { %141 = vsyncmov [#allocation2 + $0x9] }
  0x93   :  { %s142_s5 = vpop.sfrf %141 }
  0x94   :  { %p217_p7 = scmp.ne.s32.totalorder %s142_s5, 0 }
  0x96   :  { %146 = shalt.err (%p217_p7)  }
  0x97   :  { %148 = vsyncmov [#allocation2 + $0xa] }
  0x9a   :  { %s149_s6 = vpop.sfrf %148 }
  0x9b   :  { %p218_p8 = scmp.ne.s32.totalorder %s149_s6, 0 }
  0x9d   :  { %153 = shalt.err (%p218_p8)  }
  0x9e   :  { %155 = vsyncmov [#allocation2 + $0xb] }
  0xa1   :  { %s156_s7 = vpop.sfrf %155 }
  0xa2   :  { %p219_p9 = scmp.ne.s32.totalorder %s156_s7, 0 }
  0xa4   :  { %160 = shalt.err (%p219_p9)  }
  0xa5   :  { %162 = vsyncmov [#allocation2 + $0xc] }
  0xa8   :  { %s163_s8 = vpop.sfrf %162 }
  0xa9   :  { %p220_p10 = scmp.ne.s32.totalorder %s163_s8, 0 }
  0xab   :  { %167 = shalt.err (%p220_p10)  }
  0xac   :  { %169 = vsyncmov [#allocation2 + $0xd] }
  0xaf   :  { %s170_s9 = vpop.sfrf %169 }
  0xb0   :  { %p221_p11 = scmp.ne.s32.totalorder %s170_s9, 0 }
  0xb2   :  { %174 = shalt.err (%p221_p11)  }
  0xb3   :  { %176 = vsyncmov [#allocation2 + $0xe] }
  0xb6   :  { %s177_s10 = vpop.sfrf %176 }
  0xb7   :  { %p222_p12 = scmp.ne.s32.totalorder %s177_s10, 0 }
  0xb9   :  { %181 = shalt.err (%p222_p12)  }
  0xba   :  { %183 = vsyncmov [#allocation2 + $0xf] }
  0xbd   :  { %s184_s11 = vpop.sfrf %183 }
  0xbe   :  { %p223_p13 = scmp.ne.s32.totalorder %s184_s11, 0 }
  0xc0   :  { %188 = shalt.err (%p223_p13)  }

</bundles_post_ra>
